<compile_context>
chip_gen: v7x
topology: tpu7x:2x2x1
jax: 0.10.0
libtpu: 0.0.40
codegen_flags: <defaults>
</compile_context>

<pallas_src>
import functools

import jax
import jax.numpy as jnp
from jax.experimental import pallas as pl
from jax.experimental.pallas import tpu as pltpu


def _fixmatch_kernel(lx_ref, tx_ref, luw_ref, lus_ref, out_ref, *,
                     bx, bu, nx, nu, threshold, inv_temp):
    i = pl.program_id(0)

    # Each tile owns its output block; zero it so skipped branches contribute 0.
    out_ref[...] = jnp.zeros_like(out_ref)

    # ---------------- labeled branch: sum of cross entropy ----------------
    @pl.when(i < nx)
    def _labeled():
        lx = lx_ref[...].astype(jnp.float32)                  # (tbx, C)
        tbx, c = lx.shape
        row = jax.lax.broadcasted_iota(jnp.int32, (tbx, 1), 0) + i * tbx
        valid = row < bx                                      # (tbx, 1) bool
        lx = jnp.where(valid, lx, 0.0)                        # kill OOB garbage BEFORE max/exp
        tx = tx_ref[...]                                      # (tbx, 1) int32
        col = jax.lax.broadcasted_iota(jnp.int32, (tbx, c), 1)

        m = jnp.max(lx, axis=-1, keepdims=True)
        lse = jnp.log(jnp.sum(jnp.exp(lx - m), axis=-1, keepdims=True)) + m
        onehot = (col == tx).astype(jnp.float32)
        picked = jnp.sum(lx * onehot, axis=-1, keepdims=True)
        ce = (lse - picked) * valid.astype(jnp.float32)       # (tbx, 1)
        out_ref[0:1, 0:1, :] = jnp.broadcast_to(jnp.sum(ce), (1, 1, 128))

    # -------- unlabeled branch: pseudo-labels + masked cross entropy -------
    @pl.when(i < nu)
    def _unlabeled():
        luw = luw_ref[...].astype(jnp.float32)                # (tbu, C)
        lus = lus_ref[...].astype(jnp.float32)
        tbu, c = luw.shape
        row = jax.lax.broadcasted_iota(jnp.int32, (tbu, 1), 0) + i * tbu
        valid = row < bu                                      # (tbu, 1) bool
        luw = jnp.where(valid, luw, 0.0)
        lus = jnp.where(valid, lus, 0.0)
        if inv_temp != 1.0:                                   # trace-time skip at T == 1
            luw = luw * jnp.float32(inv_temp)
        col = jax.lax.broadcasted_iota(jnp.int32, (tbu, c), 1)

        mw = jnp.max(luw, axis=-1, keepdims=True)
        sumexp_w = jnp.sum(jnp.exp(luw - mw), axis=-1, keepdims=True)
        # max softmax prob = 1/sumexp_w ; prob >= threshold  <=>  sumexp_w <= 1/threshold
        mask = (sumexp_w <= jnp.float32(1.0 / threshold)).astype(jnp.float32)

        # first-argmax index (matches torch.max tie-breaking)
        is_max = luw == mw
        targets_u = jnp.min(jnp.where(is_max, col, c), axis=-1, keepdims=True)
        onehot = (col == targets_u).astype(jnp.float32)

        ms = jnp.max(lus, axis=-1, keepdims=True)
        lse_s = jnp.log(jnp.sum(jnp.exp(lus - ms), axis=-1, keepdims=True)) + ms
        picked_s = jnp.sum(lus * onehot, axis=-1, keepdims=True)
        ce_s = (lse_s - picked_s) * (mask * valid.astype(jnp.float32))   # (tbu, 1)
        out_ref[0:1, 1:2, :] = jnp.broadcast_to(jnp.sum(ce_s), (1, 1, 128))


def _pick_tile(batch, per_row_bytes, *, target_rows=512, budget_bytes=8 << 20):
    """Largest batch tile <= target_rows whose double-buffered blocks fit the budget."""
    cap = max(8, budget_bytes // max(per_row_bytes, 1))
    t = int(min(batch, target_rows, cap))
    if t < batch:
        t = max(8, (t // 8) * 8)     # sub-full tiles must be sublane(8)-aligned
    return t


def fixmatch_loss(logits_x, targets_x, logits_u_w, logits_u_s, *,
                  class_num, lambda_u=1.0, threshold=0.95, p_temperature=1.0,
                  max_tile_rows=512):
    assert logits_x.shape[-1] == class_num
    assert logits_u_w.shape == logits_u_s.shape
    assert logits_u_w.shape[-1] == class_num
    bx, c = logits_x.shape
    bu = logits_u_w.shape[0]

    # Double-buffered per-row VMEM bytes (targets block pads to 128 lanes in VMEM).
    per_row_x = 2 * c * logits_x.dtype.itemsize + 2 * 128 * 4
    per_row_u = 2 * c * (logits_u_w.dtype.itemsize + logits_u_s.dtype.itemsize)
    tbx = _pick_tile(bx, per_row_x, target_rows=max_tile_rows)
    tbu = _pick_tile(bu, per_row_u, target_rows=max_tile_rows)
    nx = pl.cdiv(bx, tbx)
    nu = pl.cdiv(bu, tbu)
    grid = (max(nx, nu),)

    tx = targets_x.astype(jnp.int32).reshape(bx, 1)   # tiny; lane-sparse VMEM block is fine

    kernel = functools.partial(
        _fixmatch_kernel, bx=bx, bu=bu, nx=nx, nu=nu,
        threshold=float(threshold), inv_temp=1.0 / float(p_temperature))

    partials = pl.pallas_call(
        kernel,
        out_shape=jax.ShapeDtypeStruct((grid[0], 8, 128), jnp.float32),
        grid=grid,
        in_specs=[
            pl.BlockSpec((tbx, c), lambda i: (jnp.minimum(i, nx - 1), 0)),
            pl.BlockSpec((tbx, 1), lambda i: (jnp.minimum(i, nx - 1), 0)),
            pl.BlockSpec((tbu, c), lambda i: (jnp.minimum(i, nu - 1), 0)),
            pl.BlockSpec((tbu, c), lambda i: (jnp.minimum(i, nu - 1), 0)),
        ],
        out_specs=pl.BlockSpec((1, 8, 128), lambda i: (i, 0, 0)),
        compiler_params=pltpu.CompilerParams(
            dimension_semantics=("parallel",),           # per-tile partials -> megacore-safe
            vmem_limit_bytes=32 * 1024 * 1024),
    )(logits_x, tx, logits_u_w, logits_u_s)

    # Tiny finalize in the wrapper (a few KB): sum partials, take means, combine.
    loss_labeled = jnp.sum(partials[:, 0, 0]) / bx
    loss_unlabeled = jnp.sum(partials[:, 1, 0]) / bu
    loss = loss_labeled + jnp.float32(lambda_u) * loss_unlabeled
    return loss, loss_labeled, loss_unlabeled


def _reference(logits_x, targets_x, logits_u_w, logits_u_s,
               *, lambda_u, threshold, p_temperature):
    def ce(logits, labels):
        lse = jax.scipy.special.logsumexp(logits, axis=-1)
        picked = jnp.take_along_axis(logits, labels[:, None], axis=-1)[:, 0]
        return lse - picked

    loss_labeled = jnp.mean(ce(logits_x, targets_x))
    pseudo = jax.nn.softmax(logits_u_w / p_temperature, axis=-1)
    max_probs = jnp.max(pseudo, axis=-1)
    targets_u = jnp.argmax(pseudo, axis=-1)
    mask = (max_probs >= threshold).astype(jnp.float32)
    loss_unlabeled = jnp.mean(ce(logits_u_s, targets_u) * mask)
    return loss_labeled + lambda_u * loss_unlabeled, loss_labeled, loss_unlabeled


if __name__ == "__main__":
    key = jax.random.PRNGKey(0)
    ka, kb = jax.random.split(key)

    # ---- config A: f32, odd sizes, forced small tile -> partial last block,
    # ---- labeled branch clamped/skipped on extra grid steps.
    c, bx, bu = 10, 6, 20
    k1, k2, k3, k4 = jax.random.split(ka, 4)
    lx = jax.random.normal(k1, (bx, c), jnp.float32)
    tx = jax.random.randint(k2, (bx,), 0, c, jnp.int32)
    luw = 4.0 * jax.random.normal(k3, (bu, c), jnp.float32)
    lus = jax.random.normal(k4, (bu, c), jnp.float32)

    got = fixmatch_loss(lx, tx, luw, lus, class_num=c, lambda_u=1.0,
                        threshold=0.95, p_temperature=1.0, max_tile_rows=8)
    jax.block_until_ready(got)
    ref = _reference(lx, tx, luw, lus, lambda_u=1.0, threshold=0.95,
                     p_temperature=1.0)
    for g, r in zip(got, ref):
        assert jnp.allclose(g, r, atol=1e-4, rtol=1e-4), (g, r)

    # ---- config B: native bf16 logits, temperature != 1, default tiling (single tile).
    c, bx, bu = 16, 8, 16
    k1, k2, k3, k4 = jax.random.split(kb, 4)
    lx = jax.random.normal(k1, (bx, c), jnp.float32).astype(jnp.bfloat16)
    tx = jax.random.randint(k2, (bx,), 0, c, jnp.int32)
    luw = (5.0 * jax.random.normal(k3, (bu, c), jnp.float32)).astype(jnp.bfloat16)
    lus = jax.random.normal(k4, (bu, c), jnp.float32).astype(jnp.bfloat16)

    got = fixmatch_loss(lx, tx, luw, lus, class_num=c, lambda_u=0.7,
                        threshold=0.9, p_temperature=0.5)
    jax.block_until_ready(got)
    ref = _reference(lx.astype(jnp.float32), tx, luw.astype(jnp.float32),
                     lus.astype(jnp.float32), lambda_u=0.7, threshold=0.9,
                     p_temperature=0.5)
    for g, r in zip(got, ref):
        assert jnp.allclose(g, r, atol=1e-4, rtol=1e-4), (g, r)

    print("KERNEL_OK")
</pallas_src>

<mosaic_0001>
module attributes {stable_mosaic.version = 11 : i64} {
  func.func @_fixmatch_kernel(%arg0: i32, %arg1: memref<6x10xf32, #tpu.memory_space<vmem>>, %arg2: memref<6x1xi32, #tpu.memory_space<vmem>>, %arg3: memref<8x10xf32, #tpu.memory_space<vmem>>, %arg4: memref<8x10xf32, #tpu.memory_space<vmem>>, %arg5: memref<1x8x128xf32, #tpu.memory_space<vmem>>) attributes {dimension_semantics = [#tpu.dimension_semantics<parallel>], iteration_bounds = array<i64: 3>, scalar_prefetch = 0 : i64, scratch_operands = 0 : i64, tpu.core_type = #tpu.core_type<tc>, window_params = [{transform_indices = @transform_0, window_bounds = array<i64: 6, 10>}, {transform_indices = @transform_1, window_bounds = array<i64: 6, 1>}, {transform_indices = @transform_2, window_bounds = array<i64: 8, 10>}, {transform_indices = @transform_3, window_bounds = array<i64: 8, 10>}, {transform_indices = @transform_4, window_bounds = array<i64: 1, 8, 128>}]} {
    %cst = arith.constant 0.000000e+00 : f32
    %0 = vector.broadcast %cst : f32 to vector<1x8x128xf32>
    %c0 = arith.constant 0 : index
    %c0_0 = arith.constant 0 : index
    %c0_1 = arith.constant 0 : index
    %1 = vector.load %arg5[%c0, %c0_0, %c0_1] : memref<1x8x128xf32, #tpu.memory_space<vmem>>, vector<1x8x128xf32>
    tpu.vector_store %arg5[%c0, %c0_0, %c0_1], %0 {strides = array<i32>} : memref<1x8x128xf32, #tpu.memory_space<vmem>>, vector<1x8x128xf32>,
    %c1_i32 = arith.constant 1 : i32
    %2 = arith.cmpi slt, %arg0, %c1_i32 : i32
    %3 = arith.extui %2 : i1 to i32
    %c0_i32 = arith.constant 0 : i32
    %4 = arith.cmpi ne, %3, %c0_i32 : i32
    scf.if %4 {
      %c0_3 = arith.constant 0 : index
      %c0_4 = arith.constant 0 : index
      %8 = vector.load %arg1[%c0_3, %c0_4] : memref<6x10xf32, #tpu.memory_space<vmem>>, vector<6x10xf32>
      %9 = tpu.iota {dimensions = array<i32: 0>} : vector<6x1xi32>
      %c6_i32 = arith.constant 6 : i32
      %10 = arith.muli %arg0, %c6_i32 : i32
      %11 = vector.broadcast %10 : i32 to vector<6x1xi32>
      %12 = arith.addi %9, %11 : vector<6x1xi32>
      %c6_i32_5 = arith.constant 6 : i32
      %13 = vector.broadcast %c6_i32_5 : i32 to vector<6x1xi32>
      %14 = arith.cmpi slt, %12, %13 : vector<6x1xi32>
      %cst_6 = arith.constant 0.000000e+00 : f32
      %15 = vector.shape_cast %14 : vector<6x1xi1> to vector<6x1xi1>
      %16 = vector.broadcast %15 : vector<6x1xi1> to vector<6x10xi1>
      %17 = vector.broadcast %cst_6 : f32 to vector<6x10xf32>
      %18 = arith.select %16, %8, %17 : vector<6x10xi1>, vector<6x10xf32>
      %c0_7 = arith.constant 0 : index
      %c0_8 = arith.constant 0 : index
      %19 = vector.load %arg2[%c0_7, %c0_8] : memref<6x1xi32, #tpu.memory_space<vmem>>, vector<6x1xi32>
      %20 = tpu.iota {dimensions = array<i32: 1>} : vector<6x10xi32>
      %cst_9 = arith.constant dense<0xFF800000> : vector<6xf32>
      %21 = vector.multi_reduction <maximumf>, %18, %cst_9 [1] : vector<6x10xf32> to vector<6xf32>
      %22 = vector.shape_cast %21 : vector<6xf32> to vector<6x1xf32>
      %23 = vector.broadcast %22 : vector<6x1xf32> to vector<6x10xf32>
      %24 = arith.subf %18, %23 : vector<6x10xf32>
      %25 = math.exp %24 : vector<6x10xf32>
      %cst_10 = arith.constant dense<0.000000e+00> : vector<6xf32>
      %26 = vector.multi_reduction <add>, %25, %cst_10 [1] : vector<6x10xf32> to vector<6xf32>
      %27 = vector.shape_cast %26 : vector<6xf32> to vector<6x1xf32>
      %28 = math.log %27 : vector<6x1xf32>
      %29 = arith.addf %28, %22 : vector<6x1xf32>
      %30 = vector.broadcast %19 : vector<6x1xi32> to vector<6x10xi32>
      %31 = arith.cmpi eq, %20, %30 : vector<6x10xi32>
      %32 = arith.extui %31 : vector<6x10xi1> to vector<6x10xi32>
      %33 = arith.sitofp %32 : vector<6x10xi32> to vector<6x10xf32>
      %34 = arith.mulf %18, %33 : vector<6x10xf32>
      %cst_11 = arith.constant dense<0.000000e+00> : vector<6xf32>
      %35 = vector.multi_reduction <add>, %34, %cst_11 [1] : vector<6x10xf32> to vector<6xf32>
      %36 = vector.shape_cast %35 : vector<6xf32> to vector<6x1xf32>
      %37 = arith.subf %29, %36 : vector<6x1xf32>
      %38 = arith.extui %14 : vector<6x1xi1> to vector<6x1xi32>
      %39 = arith.sitofp %38 : vector<6x1xi32> to vector<6x1xf32>
      %40 = arith.mulf %37, %39 : vector<6x1xf32>
      %41 = vector.shape_cast %40 : vector<6x1xf32> to vector<1x6x1xf32>
      %cst_12 = arith.constant dense<0.000000e+00> : vector<1xf32>
      %42 = vector.multi_reduction <add>, %41, %cst_12 [1, 2] : vector<1x6x1xf32> to vector<1xf32>
      %43 = vector.shape_cast %42 : vector<1xf32> to vector<1x1x1xf32>
      %44 = vector.extract %43[0, 0, 0] : f32 from vector<1x1x1xf32>
      %45 = vector.broadcast %44 : f32 to vector<1x1x128xf32>
      %c0_13 = arith.constant 0 : index
      %c0_14 = arith.constant 0 : index
      %c0_15 = arith.constant 0 : index
      %46 = vector.load %arg5[%c0_13, %c0_14, %c0_15] : memref<1x8x128xf32, #tpu.memory_space<vmem>>, vector<1x1x128xf32>
      tpu.vector_store %arg5[%c0_13, %c0_14, %c0_15], %45 {strides = array<i32>} : memref<1x8x128xf32, #tpu.memory_space<vmem>>, vector<1x1x128xf32>,
    } else {
    }
    %c3_i32 = arith.constant 3 : i32
    %5 = arith.cmpi slt, %arg0, %c3_i32 : i32
    %6 = arith.extui %5 : i1 to i32
    %c0_i32_2 = arith.constant 0 : i32
    %7 = arith.cmpi ne, %6, %c0_i32_2 : i32
    scf.if %7 {
      %c0_3 = arith.constant 0 : index
      %c0_4 = arith.constant 0 : index
      %8 = vector.load %arg3[%c0_3, %c0_4] : memref<8x10xf32, #tpu.memory_space<vmem>>, vector<8x10xf32>
      %c0_5 = arith.constant 0 : index
      %c0_6 = arith.constant 0 : index
      %9 = vector.load %arg4[%c0_5, %c0_6] : memref<8x10xf32, #tpu.memory_space<vmem>>, vector<8x10xf32>
      %10 = tpu.iota {dimensions = array<i32: 0>} : vector<8x1xi32>
      %c8_i32 = arith.constant 8 : i32
      %11 = arith.muli %arg0, %c8_i32 : i32
      %12 = vector.broadcast %11 : i32 to vector<8x1xi32>
      %13 = arith.addi %10, %12 : vector<8x1xi32>
      %c20_i32 = arith.constant 20 : i32
      %14 = vector.broadcast %c20_i32 : i32 to vector<8x1xi32>
      %15 = arith.cmpi slt, %13, %14 : vector<8x1xi32>
      %cst_7 = arith.constant 0.000000e+00 : f32
      %16 = vector.shape_cast %15 : vector<8x1xi1> to vector<8x1xi1>
      %17 = vector.broadcast %16 : vector<8x1xi1> to vector<8x10xi1>
      %18 = vector.broadcast %cst_7 : f32 to vector<8x10xf32>
      %19 = arith.select %17, %8, %18 : vector<8x10xi1>, vector<8x10xf32>
      %cst_8 = arith.constant 0.000000e+00 : f32
      %20 = vector.shape_cast %15 : vector<8x1xi1> to vector<8x1xi1>
      %21 = vector.broadcast %20 : vector<8x1xi1> to vector<8x10xi1>
      %22 = vector.broadcast %cst_8 : f32 to vector<8x10xf32>
      %23 = arith.select %21, %9, %22 : vector<8x10xi1>, vector<8x10xf32>
      %24 = tpu.iota {dimensions = array<i32: 1>} : vector<8x10xi32>
      %cst_9 = arith.constant dense<0xFF800000> : vector<8xf32>
      %25 = vector.multi_reduction <maximumf>, %19, %cst_9 [1] : vector<8x10xf32> to vector<8xf32>
      %26 = vector.shape_cast %25 : vector<8xf32> to vector<8x1xf32>
      %27 = vector.broadcast %26 : vector<8x1xf32> to vector<8x10xf32>
      %28 = arith.subf %19, %27 : vector<8x10xf32>
      %29 = math.exp %28 : vector<8x10xf32>
      %cst_10 = arith.constant dense<0.000000e+00> : vector<8xf32>
      %30 = vector.multi_reduction <add>, %29, %cst_10 [1] : vector<8x10xf32> to vector<8xf32>
      %31 = vector.shape_cast %30 : vector<8xf32> to vector<8x1xf32>
      %cst_11 = arith.constant 1.05263162 : f32
      %32 = vector.broadcast %cst_11 : f32 to vector<8x1xf32>
      %33 = arith.cmpf ole, %31, %32 : vector<8x1xf32>
      %34 = arith.extui %33 : vector<8x1xi1> to vector<8x1xi32>
      %35 = arith.sitofp %34 : vector<8x1xi32> to vector<8x1xf32>
      %36 = vector.broadcast %26 : vector<8x1xf32> to vector<8x10xf32>
      %37 = arith.cmpf oeq, %19, %36 : vector<8x10xf32>
      %c10_i32 = arith.constant 10 : i32
      %38 = vector.broadcast %c10_i32 : i32 to vector<8x10xi32>
      %39 = arith.select %37, %24, %38 : vector<8x10xi1>, vector<8x10xi32>
      %cst_12 = arith.constant dense<2147483647> : vector<8xi32>
      %40 = vector.multi_reduction <minsi>, %39, %cst_12 [1] : vector<8x10xi32> to vector<8xi32>
      %41 = vector.shape_cast %40 : vector<8xi32> to vector<8x1xi32>
      %42 = vector.broadcast %41 : vector<8x1xi32> to vector<8x10xi32>
      %43 = arith.cmpi eq, %24, %42 : vector<8x10xi32>
      %44 = arith.extui %43 : vector<8x10xi1> to vector<8x10xi32>
      %45 = arith.sitofp %44 : vector<8x10xi32> to vector<8x10xf32>
      %cst_13 = arith.constant dense<0xFF800000> : vector<8xf32>
      %46 = vector.multi_reduction <maximumf>, %23, %cst_13 [1] : vector<8x10xf32> to vector<8xf32>
      %47 = vector.shape_cast %46 : vector<8xf32> to vector<8x1xf32>
      %48 = vector.broadcast %47 : vector<8x1xf32> to vector<8x10xf32>
      %49 = arith.subf %23, %48 : vector<8x10xf32>
      %50 = math.exp %49 : vector<8x10xf32>
      %cst_14 = arith.constant dense<0.000000e+00> : vector<8xf32>
      %51 = vector.multi_reduction <add>, %50, %cst_14 [1] : vector<8x10xf32> to vector<8xf32>
      %52 = vector.shape_cast %51 : vector<8xf32> to vector<8x1xf32>
      %53 = math.log %52 : vector<8x1xf32>
      %54 = arith.addf %53, %47 : vector<8x1xf32>
      %55 = arith.mulf %23, %45 : vector<8x10xf32>
      %cst_15 = arith.constant dense<0.000000e+00> : vector<8xf32>
      %56 = vector.multi_reduction <add>, %55, %cst_15 [1] : vector<8x10xf32> to vector<8xf32>
      %57 = vector.shape_cast %56 : vector<8xf32> to vector<8x1xf32>
      %58 = arith.subf %54, %57 : vector<8x1xf32>
      %59 = arith.extui %15 : vector<8x1xi1> to vector<8x1xi32>
      %60 = arith.sitofp %59 : vector<8x1xi32> to vector<8x1xf32>
      %61 = arith.mulf %35, %60 : vector<8x1xf32>
      %62 = arith.mulf %58, %61 : vector<8x1xf32>
      %63 = vector.shape_cast %62 : vector<8x1xf32> to vector<1x8x1xf32>
      %cst_16 = arith.constant dense<0.000000e+00> : vector<1xf32>
      %64 = vector.multi_reduction <add>, %63, %cst_16 [1, 2] : vector<1x8x1xf32> to vector<1xf32>
      %65 = vector.shape_cast %64 : vector<1xf32> to vector<1x1x1xf32>
      %66 = vector.extract %65[0, 0, 0] : f32 from vector<1x1x1xf32>
      %67 = vector.broadcast %66 : f32 to vector<1x1x128xf32>
      %c0_17 = arith.constant 0 : index
      %c1 = arith.constant 1 : index
      %c0_18 = arith.constant 0 : index
      %68 = vector.load %arg5[%c0_17, %c1, %c0_18] : memref<1x8x128xf32, #tpu.memory_space<vmem>>, vector<1x1x128xf32>
      tpu.vector_store %arg5[%c0_17, %c1, %c0_18], %67 {strides = array<i32>} : memref<1x8x128xf32, #tpu.memory_space<vmem>>, vector<1x1x128xf32>,
    } else {
    }
    return
  }
  func.func @transform_0(%arg0: i32) -> (i32, i32) {
    %c0_i32 = arith.constant 0 : i32
    %0 = arith.minsi %arg0, %c0_i32 : i32
    %c0_i32_0 = arith.constant 0 : i32
    %c0_i32_1 = arith.constant 0 : i32
    return %0, %c0_i32_0 : i32, i32
  }
  func.func @transform_1(%arg0: i32) -> (i32, i32) {
    %c0_i32 = arith.constant 0 : i32
    %0 = arith.minsi %arg0, %c0_i32 : i32
    %c0_i32_0 = arith.constant 0 : i32
    %c0_i32_1 = arith.constant 0 : i32
    return %0, %c0_i32_0 : i32, i32
  }
  func.func @transform_2(%arg0: i32) -> (i32, i32) {
    %c2_i32 = arith.constant 2 : i32
    %0 = arith.minsi %arg0, %c2_i32 : i32
    %c0_i32 = arith.constant 0 : i32
    %c0_i32_0 = arith.constant 0 : i32
    return %0, %c0_i32 : i32, i32
  }
  func.func @transform_3(%arg0: i32) -> (i32, i32) {
    %c2_i32 = arith.constant 2 : i32
    %0 = arith.minsi %arg0, %c2_i32 : i32
    %c0_i32 = arith.constant 0 : i32
    %c0_i32_0 = arith.constant 0 : i32
    return %0, %c0_i32 : i32, i32
  }
  func.func @transform_4(%arg0: i32) -> (i32, i32, i32) {
    %c0_i32 = arith.constant 0 : i32
    %c0_i32_0 = arith.constant 0 : i32
    %c0_i32_1 = arith.constant 0 : i32
    return %arg0, %c0_i32, %c0_i32_0 : i32, i32, i32
  }
}

</mosaic_0001>

<bundles_post_ra>
// kernel: tpu_custom_call.1
= control target key start
LH: loop header
LB: loop body
LE: loop exit
PB: predicated region body
PF: predicated region fallthrough
CT: control target
= control target key end

     0   :  { %9 = vsyncpa [#allocation3], 0  ;;  %s874_s0 = inlined_call_operand.vmem [shape: f32[6,10], index: 0, kind: input, shape index: {}]   ;;  %s875_s1 = inlined_call_operand.vmem [shape: s32[6,1], index: 1, kind: input, shape index: {}]   ;;  %s876_s2 = inlined_call_operand.vmem [shape: f32[20,10], index: 2, kind: input, shape index: {}]   ;;  %s877_s3 = inlined_call_operand.vmem [shape: f32[20,10], index: 3, kind: input, shape index: {}]   ;;  %s878_s4 = inlined_call_operand.hbm [shape: f32[3,8,128], index: 4, kind: output, shape index: {}]  }
   0x1   :  { %11 = vsyncpa [#allocation3 + $0x1], 0  ;;  %s735_s15 = smov 0   ;;  %s737_s16 = smov 0  }
   0x2   :  { %s739_s17 = smov 0   ;;  %s741_s18 = smov 0  }
   0x3 LB: > { %s756_s19 = sadd.s32 4294967295, %s703_s18   ;;  %s550_s20 = sadd.s32 4294967294, %s703_s18   ;;  %s703_s18 = sphi %s741_s18, %s886_s18   ;;  %s699_s17 = sphi %s739_s17, %s885_s17   ;;  %s695_s16 = sphi %s737_s16, %s884_s16   ;;  %s691_s15 = sphi %s735_s15, %s883_s15  }
   0x4   : > { %s760_s21 = sadd.s32 1, %s703_s18   ;;  %s144_s22 = sadd.s32 1, %s699_s17 }
   0x5   : > { %s141_s23 = ssub.s32 %s703_s18, %s760_s21  ;;  %p154_p0 = scmp.ne.s32.totalorder %s699_s17, %s695_s16 }
   0x6   : > { %p142_p1 = scmp.eq.s32.totalorder %s141_s23, 0  ;;  %p155_p2 = scmp.eq.s32.totalorder %s756_s19, 2 }
   0x7   : > { %p160_p3 = scmp.ne.s32.totalorder %s695_s16, %s691_s15  ;;  %p161_p4 = scmp.eq.s32.totalorder %s550_s20, 2 }
   0x8   : > { %s771_s24 = scalar_select %p142_p1, %s699_s17, %s144_s22  }
   0x9   : > { %p773_p5 = por %p155_p2, %p154_p0  ;;  %p777_p6 = por %p161_p4, %p160_p3 }
   0xa   : > { %p553_p7 = scmp.ge.s32.totalorder %s703_s18, 1  ;;  %p223_p8 = scmp.lt.s32.totalorder %s703_s18, 4 }
   0xc   : > { %p224_p9 = pnand %p553_p7, %p223_p8 }
   0xd   : > { %s879_s27 = sand.u32 (!%p224_p9), 1, %s695_s16   ;;  %p268_p10 = scmp.lt.s32.totalorder (!%p224_p9), %s756_s19, 0  ;;  %v705_v0 = vmov (!%p224_p9), 0.0  }
   0xe   : > { %227 = sbr.rel (%p224_p9) target bundleno = 1392 (0x570), region = 36  ;;  %s554_s28 = sshll.u32 (!%p224_p9), %s879_s27, 3 }
   0xf   : > { %p284_p11 = scmp.lt.s32.totalorder (!%p224_p9), %s756_s19, 2  ;;  %s789_s30 = scalar_lea.vmem (!%p224_p9), [#allocation2], %s554_s28 }
  0x10   : > { %300 = vst [vmem:[%s789_s30] sm:$0xff] (!%p224_p9), %v705_v0  ;;  %p571_p12 = scmp.ge.s32.totalorder (!%p224_p9), %s756_s19, 1 }
  0x15   : > { %s269_s29 = scalar_select %p268_p10, %s756_s19, 0 }
  0x16   : > { %s285_s5 = scalar_select %p284_p11, %s756_s19, 2 }
  0x17   : > { %s888_s29 = smov (!%p268_p10, %s269_s29), 0  ;;  %304 = sbr.rel (%p571_p12) target bundleno = 560 (0x230), region = 40 }
  0x18   : > { %s890_s5 = smov (!%p284_p11, %s285_s5), 2  ;;  %s558_s6 = sshll.u32 %s888_s29, 3  ;;  %v306_v1 = vlaneseq (!%p571_p12)  ;;  %v706_v2 = vmov (!%p571_p12), 0   ;;  %vm318_vm0 = vcmask (!%p571_p12), 78848   ;;  %v707_v15 = vmov (!%p571_p12), 0.0  }
  0x19   : > { %s273_s9 = scalar_lea.vmem %s874_s0, %s558_s6  ;;  %s281_s12 = scalar_lea.vmem %s875_s1, %s558_s6  ;;  %630 = vset.pattern.permute.xlu0 (!%p571_p12), %v706_v2  ;;  %vm344_vm3 = vcmask (!%p571_p12), 5120  }
  0x1a   : > { %s566_s13 = sshll.u32 %s890_s5, 3  ;;  %s308_s29 = smul.u32 (!%p571_p12), 6, %s756_s19  ;;  %v307_v3 = vshrl.u32 (!%p571_p12), %v306_v1, 7  ;;  %v305_v5 = vld [vmem:[%s273_s9] sm:$0x3f] (!%p571_p12)  ;;  %v317_v13 = vand.u32 (!%p571_p12), 127, %v306_v1 }
  0x1b   : > { %s802_s22 = scalar_lea.vmem %s876_s2, %s566_s13  ;;  %s807_s27 = scalar_lea.vmem %s877_s3, %s566_s13  ;;  %v315_v9 = vld [vmem:[%s281_s12] sm:$0x3f] (!%p571_p12) }
  0x1c   : > { %v309_v4 = vstv (!%p571_p12), %s308_s29 }
  0x1d   : > { %v310_v6 = vadd.s32 (!%p571_p12), %v309_v4, %v307_v3 }
  0x1f   : > { %vm311_vm1 = vcmp.lt.s32.totalorder %v310_v6, 6 }
  0x20   : > { %v314_v7 = vsel %vm311_vm1, %v305_v5, 0.0  ;;  %v573_v26 = vsel %vm311_vm1, 1.0, %v707_v15 }
  0x21   : > { %v319_v8 = vsel %vm318_vm0, %v314_v7, -inf }
  0x22   : > { %320 = vmax.xlane.f32.xlu0 %v319_v8 }
  0x38   : > { %332 = vperm.xlu0 %630, %v315_v9  }
  0xaf   : > { %v321_v10 = vpop.xlane.xlu0 %320 }
  0xb0   : > { %v322_v11 = vsub.f32 %v314_v7, %v321_v10 }
  0xb2   : > { %v323_v12 = vmul.f32 1.442695, %v322_v11 }
  0xb4   : > { %631 = vpow2.f32 %v323_v12 }
  0xb7   : > { %v333_v14 = vpop.permute.xlu0 %332 }
  0xb8   : > { %vm334_vm2 = vcmp.eq.s32.totalorder %v317_v13, %v333_v14 }
  0xb9   : > { %v572_v16 = vsel %vm334_vm2, 1.0, %v707_v15 }
  0xba   : > { %v337_v17 = vmul.f32 %v572_v16, %v314_v7 }
  0xbc   : > { %v338_v20 = vsel %vm318_vm0, %v337_v17, 0.0 }
  0xbe   : > { %v632_v18 = vpop.eup %631 }
  0xbf   : > { %v325_v19 = vsel %vm318_vm0, %v632_v18, 0.0 }
  0xc0   : > { %326 = vadd.xlane.f32.xlu1 %v325_v19 }
  0xc4   : > { %339 = vadd.xlane.f32.xlu1 %v338_v20 }
 0x14d   : > { %v327_v21 = vpop.xlane.xlu1 %326 }
 0x14e   : > { %633 = vlog2.f32 %v327_v21 }
 0x151   : > { %v340_v24 = vpop.xlane.xlu1 %339 }
 0x158   : > { %v634_v22 = vpop.eup %633 }
 0x159   : > { %v329_v23 = vmul.f32 0.6931472, %v634_v22 }
 0x15b   : > { %v330_v25 = vadd.f32 %v329_v23, %v321_v10 }
 0x15d   : > { %v341_v27 = vsub.f32 %v330_v25, %v340_v24 }
 0x15f   : > { %v343_v28 = vmul.f32 %v573_v26, %v341_v27 }
 0x161   : > { %v345_v29 = vsel %vm344_vm3, %v343_v28, 0.0 }
 0x162   : > { %346 = vadd.xlane.f32.xlu1 %v345_v29 }
 0x1ef   : > { %v347_v30 = vpop.xlane.xlu1 %346 }
 0x1f0   : > { %v348_v31 = vrot.slane %v347_v30, 4 }
 0x1f2   : > { %v349_v32 = vadd.f32 %v348_v31, %v347_v30 }
 0x1f4   : > { %v350_v33 = vrot.slane %v349_v32, 2 }
 0x1f6   : > { %v351_v34 = vadd.f32 %v350_v33, %v349_v32 }
 0x1f8   : > { %v352_v35 = vrot.slane %v351_v34, 1 }
 0x1fa   : > { %v353_v36 = vadd.f32 %v352_v35, %v351_v34 }
 0x1fc   : > { %583 = vpush %v353_v36 }
 0x22d   : > { %s584_s5 = spop %583 }
 0x22e   : > { %v355_v37 = vstv %s584_s5 }
 0x22f   : > { %356 = vst [vmem:[%s789_s30] sm:$0x1] %v355_v37 }
 0x230 PF: > { %p574_p13 = scmp.ge.s32.totalorder %s756_s19, 3 }
 0x231   : > { %v363_v38 = vlaneseq (!%p574_p13)  ;;  %s575_s6 = sshll.u32 (!%p574_p13), %s756_s19, 3  ;;  %v361_v41 = vld [vmem:[%s802_s22] sm:$0xff] (!%p574_p13)  ;;  %vm375_vm4 = vcmask (!%p574_p13), 80896   ;;  %v708_v8 = vmov (!%p574_p13), 0.0   ;;  %vm428_vm10 = vcmask (!%p574_p13), 7168  }
 0x232   : > { %360 = sbr.rel (%p574_p13) target bundleno = 1367 (0x557), region = 44  ;;  %v366_v39 = vstv (!%p574_p13), %s575_s6  ;;  %v362_v43 = vld [vmem:[%s807_s27] sm:$0xff] (!%p574_p13) }
 0x233   : > { %v364_v40 = vshrl.u32 (!%p574_p13), %v363_v38, 7  ;;  %v374_v48 = vand.u32 (!%p574_p13), 127, %v363_v38 }
 0x235   : > { %v367_v42 = vadd.s32 (!%p574_p13), %v366_v39, %v364_v40 }
 0x237   : > { %vm368_vm5 = vcmp.lt.s32.totalorder (!%p574_p13), %v367_v42, 20 }
 0x238   : > { %v371_v44 = vsel (!%p574_p13), %vm368_vm5, %v361_v41, 0.0  ;;  %v372_v45 = vsel (!%p574_p13), %vm368_vm5, %v362_v43, 0.0  ;;  %v578_v16 = vsel (!%p574_p13), %vm368_vm5, 1.0, %v708_v8 }
 0x239   : > { %v376_v46 = vsel %vm375_vm4, %v371_v44, -inf  ;;  %v408_v47 = vsel %vm375_vm4, %v372_v45, -inf }
 0x23a   : > { %377 = vmax.xlane.f32.xlu0 %v376_v46  ;;  %409 = vmax.xlane.f32.xlu1 %v408_v47 }
 0x2c7   : > { %v378_v49 = vpop.xlane.xlu0 %377  ;;  %v410_v50 = vpop.xlane.xlu1 %409 }
 0x2c8   : > { %vm388_vm6 = vcmp.eq.f32.partialorder %v371_v44, %v378_v49  ;;  %v411_v51 = vsub.f32 %v372_v45, %v410_v50  ;;  %v379_v59 = vsub.f32 %v371_v44, %v378_v49 }
 0x2c9   : > { %v389_v52 = vsel %vm388_vm6, %v374_v48, 10 }
 0x2ca   : > { %v390_v53 = vsel %vm375_vm4, %v389_v52, 2147483647  ;;  %v412_v54 = vmul.f32 1.442695, %v411_v51  ;;  %v380_v60 = vmul.f32 1.442695, %v379_v59 }
 0x2cb   : > { %v392_v55 = vshra.s32 %v390_v53, 16  ;;  %v391_v61 = vand.u32 65535, %v390_v53 }
 0x2cc   : > { %635 = vpow2.f32 %v412_v54 }
 0x2cd   : > { %v394_v56 = vcvt.s32.f32 %v392_v55  ;;  %637 = vpow2.f32 %v380_v60  ;;  %v393_v63 = vcvt.s32.f32 %v391_v61 }
 0x2cf   : > { %395 = vmin.xlane.f32.xlu0 %v394_v56 }
 0x2d6   : > { %v636_v57 = vpop.eup %635 }
 0x2d7   : > { %v414_v58 = vsel %vm375_vm4, %v636_v57, 0.0  ;;  %v638_v1 = vpop.eup %637 }
 0x2d8   : > { %415 = vadd.xlane.f32.xlu0 %v414_v58  ;;  %v382_v2 = vsel %vm375_vm4, %v638_v1, 0.0 }
 0x35c   : > { %v396_v62 = vpop.xlane.xlu0 %395 }
 0x35d   : > { %vm397_vm7 = vcmp.eq.f32.partialorder %v394_v56, %v396_v62  ;;  %v402_v3 = vcvt.f32.s32 %v396_v62 }
 0x35e   : > { %v398_v0 = vsel %vm397_vm7, %v393_v63, inf }
 0x35f   : > { %399 = vmin.xlane.f32.xlu1 %v398_v0  ;;  %v403_v5 = vshll.u32 %v402_v3, 16 }
 0x363   : > { %383 = vadd.xlane.f32.xlu1 %v382_v2 }
 0x365   : > { %v416_v12 = vpop.xlane.xlu0 %415 }
 0x366   : > { %639 = vlog2.f32 %v416_v12 }
 0x370   : > { %v640_v13 = vpop.eup %639 }
 0x371   : > { %v418_v15 = vmul.f32 0.6931472, %v640_v13 }
 0x373   : > { %v419_v18 = vadd.f32 %v418_v15, %v410_v50 }
 0x3ec   : > { %v400_v4 = vpop.xlane.xlu1 %399 }
 0x3ed   : > { %v401_v6 = vcvt.f32.s32 %v400_v4 }
 0x3ef   : > { %v404_v7 = vadd.s32 %v403_v5, %v401_v6 }
 0x3f0   : > { %v384_v14 = vpop.xlane.xlu1 %383 }
 0x3f1   : > { %vm405_vm8 = vcmp.eq.s32.totalorder %v374_v48, %v404_v7  ;;  %vm385_vm9 = vcmp.le.f32.partialorder %v384_v14, 1.0526316 }
 0x3f2   : > { %v577_v9 = vsel %vm405_vm8, 1.0, %v708_v8  ;;  %v576_v17 = vsel %vm385_vm9, 1.0, %v708_v8 }
 0x3f3   : > { %v420_v10 = vmul.f32 %v577_v9, %v372_v45  ;;  %v426_v20 = vmul.f32 %v578_v16, %v576_v17 }
 0x3f5   : > { %v421_v11 = vsel %vm375_vm4, %v420_v10, 0.0 }
 0x3f6   : > { %422 = vadd.xlane.f32.xlu0 %v421_v11 }
 0x483   : > { %v423_v19 = vpop.xlane.xlu0 %422 }
 0x484   : > { %v424_v21 = vsub.f32 %v419_v18, %v423_v19 }
 0x486   : > { %v427_v22 = vmul.f32 %v426_v20, %v424_v21 }
 0x488   : > { %v429_v23 = vsel %vm428_vm10, %v427_v22, 0.0 }
 0x489   : > { %430 = vadd.xlane.f32.xlu1 %v429_v23 }
 0x516   : > { %v431_v24 = vpop.xlane.xlu1 %430 }
 0x517   : > { %v432_v25 = vrot.slane %v431_v24, 4 }
 0x519   : > { %v433_v26 = vadd.f32 %v432_v25, %v431_v24 }
 0x51b   : > { %v434_v27 = vrot.slane %v433_v26, 2 }
 0x51d   : > { %v435_v28 = vadd.f32 %v434_v27, %v433_v26 }
 0x51f   : > { %v436_v29 = vrot.slane %v435_v28, 1 }
 0x521   : > { %v437_v30 = vadd.f32 %v436_v29, %v435_v28 }
 0x523   : > { %585 = vpush %v437_v30 }
 0x554   : > { %s586_s27 = spop %585 }
 0x555   : > { %v439_v31 = vstv %s586_s27 }
 0x556   : > { %440 = vst [vmem:[%s789_s30 + $0x1] sm:$0x1] %v439_v31 }
 0x557 PF: > { %s580_s7 = sshll.u32 %s756_s19, 7  ;;  %s455_s11 = sshll.u32 %s789_s30, 4  ;;  %s456_s11 = int_to_ptr.vmem [resolvable:$true] %s455_s11 }
 0x558   : > { %s835_s10 = scalar_lea.hbm %s878_s4, %s580_s7  ;;  %s882_s12 = sand.u32 1, %s695_s16  }
 0x559   : > { %s442_s13 = scalar_lea.sflag [#allocation3], %s882_s12  ;;  %s641_s14 = scalar_lea.vmem %s456_s11, 128 }
 0x55a   : > { %p642_p0 = scmp.ne.s32.totalorder %s456_s11, %s641_s14  ;;  %s709_s20 = smov [#allocation2]  }
 0x55b   : > { %s645_s22 = sshll.u32 %s709_s20, 4  ;;  %s646_s22 = int_to_ptr.vmem [resolvable:$false] %s645_s22 }
 0x55c   : > { %p643_p1 = pnand %p642_p0, %p773_p5  ;;  %s647_s23 = scalar_lea.vmem %s646_s22, 256 }
 0x55d   : > { %p648_p3 = scmp.lt.s32.totalorder %s456_s11, %s646_s22  ;;  %p649_p4 = scmp.lt.s32.totalorder %s647_s23, %s641_s14 }
 0x55e   : > { %p644_p2 = pneg %p643_p1 }
 0x55f   : > { %p650_p7 = por %p649_p4, %p648_p3 }
 0x561   : > { %p651_p8 = pnand %p650_p7, %p644_p2 }
 0x563   : > { %654 = shalt.err (!%p651_p8)
}
 0x564   : > { %s655_s19 = scalar_lea.hbm %s835_s10, 128  ;;  %s659_s29 = scalar_lea.hbm %s878_s4, 384 }
 0x565   : > { %p656_p9 = scmp.ne.s32.totalorder %s835_s10, %s655_s19  ;;  %p660_p12 = scmp.lt.u32.totalorder %s835_s10, %s878_s4 }
 0x566   : > { %p661_p13 = scmp.lt.u32.totalorder %s659_s29, %s655_s19  ;;  %p663_p1 = scmp.lt.u32.totalorder %s655_s19, %s835_s10 }
 0x567   : > { %p657_p10 = pnand %p656_p9, %p773_p5 }
 0x568   : > { %p662_p0 = por %p661_p13, %p660_p12 }
 0x569   : > { %p658_p11 = pneg %p657_p10 }
 0x56a   : > { %p664_p2 = por %p663_p1, %p662_p0 }
 0x56c   : > { %p665_p3 = pnand %p664_p2, %p658_p11 }
 0x56e   : > { %668 = shalt.err (!%p665_p3)
}
 0x56f   : > { %587 = dma.vmem_to_hbm [thread:$0]  (%p773_p5), %s456_s11, 128, %s835_s10, %s442_s13  }
 0x570 PF: > { %p593_p4 = scmp.ge.s32.totalorder %s703_s18, 2  ;;  %s467_s27 = sand.u32 1, %s691_s15  }
 0x571   : > { %s468_s7 = scalar_lea.sflag [#allocation3], %s467_s27 }
 0x572   : > { %p590_p7 = pnand %p593_p4, %p777_p6 }
 0x574   : > { %686 = dma.done.wait (!%p590_p7), %s468_s7, 128  }
 0x575   : > { %688 = vsyncadd (!%p590_p7), %s468_s7, 4294967168  ;;  %p14_p8 = scmp.ge.s32.totalorder %s760_s21, 5   ;;  %s883_s15 = smov %s695_s16 }
 0x576   : > { %s884_s16 = smov %s699_s17  ;;  %s885_s17 = smov %s771_s24 }
 0x577   : > { %s886_s18 = smov %s760_s21  ;;  %16 = sbr.rel (!%p14_p8) target bundleno = 3 (0x3), region = 88 }
 0x57e   :  { %473 = vsyncpa [#allocation3], 1 }
 0x57f   :  { %475 = vsyncpa [#allocation3 + $0x1], 1 }

</bundles_post_ra>
